<compile_context>
chip_gen: v5e
topology: v5e:2x2
jax: 0.10.0
libtpu: 0.0.40
codegen_flags: <defaults>
</compile_context>

<pallas_src>
import jax
import jax.numpy as jnp
from jax import lax
from jax.experimental import pallas as pl
from jax.experimental.pallas import tpu as pltpu

IGNORE_INDEX = -100  # nn.CrossEntropyLoss default


def _round_up(x, m):
    return ((x + m - 1) // m) * m


def gpt_lm_loss(logits, labels, *, tile_rows=256, tile_vocab=None,
                vmem_logits_budget=32 * 1024 * 1024):
    """logits: (B, S, V) float (f32 or bf16), labels: (B, S) int.

    Returns scalar f32 loss equal to
        nn.CrossEntropyLoss()(logits[..., :-1, :].reshape(-1, V),
                              labels[..., 1:].reshape(-1))
    """
    B, S, V = logits.shape
    n_rows = B * S

    # Free reshape (contiguous) — no HBM copy of the logits.
    flat_logits = logits.reshape(n_rows, V)

    # Shift on the labels only (tiny): row (b, s) predicts labels[b, s+1];
    # the last position per sequence is ignored.
    shift_labels = jnp.concatenate(
        [labels[:, 1:].astype(jnp.int32),
         jnp.full((B, 1), IGNORE_INDEX, jnp.int32)], axis=1).reshape(-1)

    itemsize = jnp.dtype(logits.dtype).itemsize

    # Row tile: multiple of 16 (covers f32/bf16 sublane packing).
    tm = max(16, min(int(tile_rows), _round_up(n_rows, 16)))
    tm = _round_up(tm, 16)

    # Vocab tile: full V if two double-buffered (tm, V) blocks fit the budget,
    # otherwise the largest multiple of 128 that does (online logsumexp).
    if tile_vocab is None:
        if 2 * tm * V * itemsize <= vmem_logits_budget:
            tv = V
        else:
            tv = max(128, (vmem_logits_budget // (2 * tm * itemsize)) // 128 * 128)
    else:
        tv = min(_round_up(int(tile_vocab), 128), V)

    num_row_blocks = pl.cdiv(n_rows, tm)
    num_vocab_blocks = pl.cdiv(V, tv)
    padded_rows = num_row_blocks * tm

    # Pad only the (tiny) labels; padded rows -> ignore_index -> zero loss.
    if padded_rows != n_rows:
        labels_padded = jnp.pad(shift_labels, (0, padded_rows - n_rows),
                                constant_values=IGNORE_INDEX)
    else:
        labels_padded = shift_labels
    labels2d = labels_padded.reshape(padded_rows, 1)

    compiler_params_kwargs = dict(vmem_limit_bytes=48 * 1024 * 1024)

    if num_vocab_blocks == 1:
        # --- Single-pass fast path: whole vocab resident, no scratch carry ---
        mask_cols = (V % 128) != 0  # guard padded lanes of the last vreg

        def kernel(logits_ref, labels_ref, loss_ref):
            x = logits_ref[...].astype(jnp.float32)              # (tm, V)
            lbl = labels_ref[...]                                 # (tm, 1)
            col = lax.broadcasted_iota(jnp.int32, x.shape, 1)
            if mask_cols:
                x = jnp.where(col < V, x, -jnp.inf)
            m = jnp.max(x, axis=-1, keepdims=True)
            lse = m + jnp.log(jnp.sum(jnp.exp(x - m), axis=-1, keepdims=True))
            tgt = jnp.sum(jnp.where(col == lbl, x, 0.0), axis=-1, keepdims=True)
            loss_ref[...] = jnp.where(lbl != IGNORE_INDEX, lse - tgt, 0.0)

        grid_spec = pltpu.PrefetchScalarGridSpec(
            num_scalar_prefetch=0,
            grid=(num_row_blocks,),
            in_specs=[
                pl.BlockSpec((tm, tv), lambda i: (i, 0)),
                pl.BlockSpec((tm, 1), lambda i: (i, 0)),
            ],
            out_specs=pl.BlockSpec((tm, 1), lambda i: (i, 0)),
            scratch_shapes=[],
        )
        dim_sem = ("parallel",)
    else:
        # --- Vocab-tiled path with online logsumexp carried in VMEM scratch ---
        mask_cols = (V % tv) != 0  # only the last vocab block needs masking

        def kernel(logits_ref, labels_ref, loss_ref, m_sc, s_sc, t_sc):
            j = pl.program_id(1)

            @pl.when(j == 0)
            def _():
                m_sc[...] = jnp.full_like(m_sc, -jnp.inf)
                s_sc[...] = jnp.zeros_like(s_sc)
                t_sc[...] = jnp.zeros_like(t_sc)

            x = logits_ref[...].astype(jnp.float32)               # (tm, tv)
            lbl = labels_ref[...]                                  # (tm, 1)

            # Global column index of each lane in this vocab block.
            col = lax.broadcasted_iota(jnp.int32, x.shape, 1) + j * tv
            if mask_cols:
                x = jnp.where(col < V, x, -jnp.inf)

            # Online (streaming) logsumexp update.
            blk_max = jnp.max(x, axis=-1, keepdims=True)           # (tm, 1)
            m_prev = m_sc[...]
            m_new = jnp.maximum(m_prev, blk_max)
            s_sc[...] = (s_sc[...] * jnp.exp(m_prev - m_new)
                         + jnp.sum(jnp.exp(x - m_new), axis=-1, keepdims=True))
            m_sc[...] = m_new

            # Target logit lives in exactly one vocab block; accumulate via
            # iota-compare (no dynamic gather).  Padded / OOB rows have
            # label = -100 which never matches, so they contribute 0.
            t_sc[...] = t_sc[...] + jnp.sum(
                jnp.where(col == lbl, x, 0.0), axis=-1, keepdims=True)

            @pl.when(j == pl.num_programs(1) - 1)
            def _():
                lse = m_sc[...] + jnp.log(s_sc[...])
                valid = lbl != IGNORE_INDEX
                loss_ref[...] = jnp.where(valid, lse - t_sc[...], 0.0)

        grid_spec = pltpu.PrefetchScalarGridSpec(
            num_scalar_prefetch=0,
            grid=(num_row_blocks, num_vocab_blocks),
            in_specs=[
                pl.BlockSpec((tm, tv), lambda i, j: (i, j)),   # logits tile
                pl.BlockSpec((tm, 1), lambda i, j: (i, 0)),    # labels (revisited)
            ],
            out_specs=pl.BlockSpec((tm, 1), lambda i, j: (i, 0)),
            scratch_shapes=[pltpu.VMEM((tm, 1), jnp.float32)] * 3,
        )
        dim_sem = ("parallel", "arbitrary")

    per_row_loss = pl.pallas_call(
        kernel,
        out_shape=jax.ShapeDtypeStruct((padded_rows, 1), jnp.float32),
        grid_spec=grid_spec,
        compiler_params=pltpu.CompilerParams(
            dimension_semantics=dim_sem, **compiler_params_kwargs),
    )(flat_logits, labels2d)

    valid_cnt = jnp.sum((shift_labels != IGNORE_INDEX).astype(jnp.float32))
    return (jnp.sum(per_row_loss) / valid_cnt).astype(jnp.float32)


def _reference_loss(logits, labels):
    # Pure-JAX reference of nn.CrossEntropyLoss()(shifted logits, shifted labels).
    B, S, V = logits.shape
    x = logits[:, :-1, :].reshape(-1, V).astype(jnp.float32)
    y = labels[:, 1:].reshape(-1).astype(jnp.int32)
    lse = jax.nn.logsumexp(x, axis=-1)
    tgt = jnp.take_along_axis(x, y[:, None], axis=-1)[:, 0]
    valid = (y != IGNORE_INDEX)
    loss = jnp.where(valid, lse - tgt, 0.0)
    return jnp.sum(loss) / jnp.sum(valid.astype(jnp.float32))


if __name__ == "__main__":
    key = jax.random.PRNGKey(0)

    # Case 1: small, evenly tiled, single vocab block, f32 (fast path).
    k1, k2, key = jax.random.split(key, 3)
    B, S, V = 2, 8, 128
    logits = jax.random.normal(k1, (B, S, V), dtype=jnp.float32)
    labels = jax.random.randint(k2, (B, S), 0, V, dtype=jnp.int32)
    out = jax.block_until_ready(gpt_lm_loss(logits, labels))
    ref = jax.block_until_ready(_reference_loss(logits, labels))
    assert jnp.allclose(out, ref, rtol=1e-5, atol=1e-5), (out, ref)

    # Case 2: forced vocab tiling -> exercises the online logsumexp carry.
    k1, k2, key = jax.random.split(key, 3)
    B, S, V = 2, 8, 512
    logits = jax.random.normal(k1, (B, S, V), dtype=jnp.float32)
    labels = jax.random.randint(k2, (B, S), 0, V, dtype=jnp.int32)
    out = jax.block_until_ready(gpt_lm_loss(logits, labels, tile_vocab=128))
    ref = jax.block_until_ready(_reference_loss(logits, labels))
    assert jnp.allclose(out, ref, rtol=1e-5, atol=1e-5), (out, ref)

    # Case 3: bf16 logits, ragged rows (n_rows=18) and ragged vocab (384 % 256),
    # exercising the OOB row masking and -inf column masking paths.
    k1, k2, key = jax.random.split(key, 3)
    B, S, V = 2, 9, 384
    logits = jax.random.normal(k1, (B, S, V), dtype=jnp.bfloat16)
    labels = jax.random.randint(k2, (B, S), 0, V, dtype=jnp.int32)
    out = jax.block_until_ready(gpt_lm_loss(logits, labels, tile_vocab=256))
    ref = jax.block_until_ready(_reference_loss(logits, labels))
    assert jnp.allclose(out, ref, rtol=1e-3, atol=1e-3), (out, ref)

    # Case 4: vocab not a multiple of 128 on the fast path + explicit
    # ignore_index labels mixed in.
    k1, k2, key = jax.random.split(key, 3)
    B, S, V = 2, 8, 200
    logits = jax.random.normal(k1, (B, S, V), dtype=jnp.float32)
    labels = jax.random.randint(k2, (B, S), 0, V, dtype=jnp.int32)
    labels = labels.at[0, 3].set(IGNORE_INDEX).at[1, 5].set(IGNORE_INDEX)
    out = jax.block_until_ready(gpt_lm_loss(logits, labels))
    ref = jax.block_until_ready(_reference_loss(logits, labels))
    assert jnp.allclose(out, ref, rtol=1e-5, atol=1e-5), (out, ref)

    print("KERNEL_OK")
</pallas_src>

<mosaic_0001>
module attributes {stable_mosaic.version = 11 : i64} {
  func.func @kernel(%arg0: i32, %arg1: memref<16x128xf32, #tpu.memory_space<vmem>>, %arg2: memref<16x1xi32, #tpu.memory_space<vmem>>, %arg3: memref<16x1xf32, #tpu.memory_space<vmem>>) attributes {dimension_semantics = [#tpu.dimension_semantics<parallel>], iteration_bounds = array<i64: 1>, scalar_prefetch = 0 : i64, scratch_operands = 0 : i64, tpu.core_type = #tpu.core_type<tc>, window_params = [{transform_indices = @transform_0, window_bounds = array<i64: 16, 128>}, {transform_indices = @transform_1, window_bounds = array<i64: 16, 1>}, {transform_indices = @transform_2, window_bounds = array<i64: 16, 1>}]} {
    %c0 = arith.constant 0 : index
    %c0_0 = arith.constant 0 : index
    %0 = vector.load %arg1[%c0, %c0_0] : memref<16x128xf32, #tpu.memory_space<vmem>>, vector<16x128xf32>
    %c0_1 = arith.constant 0 : index
    %c0_2 = arith.constant 0 : index
    %1 = vector.load %arg2[%c0_1, %c0_2] : memref<16x1xi32, #tpu.memory_space<vmem>>, vector<16x1xi32>
    %2 = tpu.iota {dimensions = array<i32: 1>} : vector<16x128xi32>
    %cst = arith.constant dense<0xFF800000> : vector<16xf32>
    %3 = vector.multi_reduction <maximumf>, %0, %cst [1] : vector<16x128xf32> to vector<16xf32>
    %4 = vector.shape_cast %3 : vector<16xf32> to vector<16x1xf32>
    %5 = vector.broadcast %4 : vector<16x1xf32> to vector<16x128xf32>
    %6 = arith.subf %0, %5 : vector<16x128xf32>
    %7 = math.exp %6 : vector<16x128xf32>
    %cst_3 = arith.constant dense<0.000000e+00> : vector<16xf32>
    %8 = vector.multi_reduction <add>, %7, %cst_3 [1] : vector<16x128xf32> to vector<16xf32>
    %9 = vector.shape_cast %8 : vector<16xf32> to vector<16x1xf32>
    %10 = math.log %9 : vector<16x1xf32>
    %11 = arith.addf %4, %10 : vector<16x1xf32>
    %12 = vector.broadcast %1 : vector<16x1xi32> to vector<16x128xi32>
    %13 = arith.cmpi eq, %2, %12 : vector<16x128xi32>
    %cst_4 = arith.constant 0.000000e+00 : f32
    %14 = vector.broadcast %cst_4 : f32 to vector<16x128xf32>
    %15 = arith.select %13, %0, %14 : vector<16x128xi1>, vector<16x128xf32>
    %cst_5 = arith.constant dense<0.000000e+00> : vector<16xf32>
    %16 = vector.multi_reduction <add>, %15, %cst_5 [1] : vector<16x128xf32> to vector<16xf32>
    %17 = vector.shape_cast %16 : vector<16xf32> to vector<16x1xf32>
    %c-100_i32 = arith.constant -100 : i32
    %18 = vector.broadcast %c-100_i32 : i32 to vector<16x1xi32>
    %19 = arith.cmpi ne, %1, %18 : vector<16x1xi32>
    %20 = arith.subf %11, %17 : vector<16x1xf32>
    %cst_6 = arith.constant 0.000000e+00 : f32
    %21 = vector.broadcast %cst_6 : f32 to vector<16x1xf32>
    %22 = arith.select %19, %20, %21 : vector<16x1xi1>, vector<16x1xf32>
    %c0_7 = arith.constant 0 : index
    %c0_8 = arith.constant 0 : index
    %23 = vector.load %arg3[%c0_7, %c0_8] : memref<16x1xf32, #tpu.memory_space<vmem>>, vector<16x1xf32>
    tpu.vector_store %arg3[%c0_7, %c0_8], %22 {strides = array<i32>} : memref<16x1xf32, #tpu.memory_space<vmem>>, vector<16x1xf32>,
    return
  }
  func.func @transform_0(%arg0: i32) -> (i32, i32) {
    %c0_i32 = arith.constant 0 : i32
    %c0_i32_0 = arith.constant 0 : i32
    return %arg0, %c0_i32 : i32, i32
  }
  func.func @transform_1(%arg0: i32) -> (i32, i32) {
    %c0_i32 = arith.constant 0 : i32
    %c0_i32_0 = arith.constant 0 : i32
    return %arg0, %c0_i32 : i32, i32
  }
  func.func @transform_2(%arg0: i32) -> (i32, i32) {
    %c0_i32 = arith.constant 0 : i32
    %c0_i32_0 = arith.constant 0 : i32
    return %arg0, %c0_i32 : i32, i32
  }
}

</mosaic_0001>

<bundles_post_ra>
// kernel: tpu_custom_call.1
= control target key start
LH: loop header
LB: loop body
LE: loop exit
PB: predicated region body
PF: predicated region fallthrough
CT: control target
= control target key end

     0   :  { %v75_v1 = vmov 0   ;;  %v15_v5 = vlaneseq  ;;  %vm57_vm3 = vcmask 7168   ;;  %s109_s0 = inlined_call_operand.vmem [shape: f32[16,128], index: 0, kind: input, shape index: {}]   ;;  %s110_s1 = inlined_call_operand.vmem [shape: s32[16,1], index: 1, kind: input, shape index: {}]   ;;  %s111_s2 = inlined_call_operand.vmem [shape: f32[16,1], index: 2, kind: output, shape index: {}]  }
   0x1   :  { %v11_v0 = vld [vmem:[%s109_s0] sm:$0xff]  ;;  %65 = vset.pattern.permute.xlu1 %v75_v1  ;;  %66 = vset.pattern.permute.xlu0 %v75_v1  ;;  %v12_v3 = vld [vmem:[%s109_s0 + $0x8] sm:$0xff] }
   0x2   :  { %v13_v2 = vld [vmem:[%s110_s1] sm:$0xff]  ;;  %17 = vmax.xlane.f32.xlu0 %v11_v0  ;;  %v14_v4 = vld [vmem:[%s110_s1 + $0x8] sm:$0xff]  ;;  %v16_v6 = vand.u32 127, %v15_v5 }
   0x3   :  { %38 = vperm.xlu1 %65, %v13_v2   ;;  %vm51_vm2 = vcmp.ne.s32.totalorder %v13_v2, 4294967196  ;;  %vm52_vm4 = vcmp.ne.s32.totalorder %v14_v4, 4294967196 }
   0xa   :  { %19 = vmax.xlane.f32.xlu0 %v12_v3 }
   0xb   :  { %41 = vperm.xlu1 %65, %v14_v4  }
  0x75   :  { %v39_v7 = vpop.permute.xlu1 %38  ;;  %v18_v8 = vpop.xlane.xlu0 %17 }
  0x76   :  { %vm43_vm0 = vcmp.eq.s32.totalorder %v16_v6, %v39_v7  ;;  %v21_v9 = vsub.f32 %v11_v0, %v18_v8 }
  0x77   :  { %v45_v10 = vsel %vm43_vm0, %v11_v0, 0.0 }
  0x78   :  { %47 = vadd.xlane.f32.xlu0 %v45_v10  ;;  %v23_v11 = vmul.f32 1.442695, %v21_v9 }
  0x7a   :  { %67 = vpow2.f32 %v23_v11 }
  0x7d   :  { %v42_v12 = vpop.permute.xlu1 %41  ;;  %v20_v13 = vpop.xlane.xlu0 %19 }
  0x7e   :  { %vm44_vm1 = vcmp.eq.s32.totalorder %v16_v6, %v42_v12  ;;  %v22_v14 = vsub.f32 %v12_v3, %v20_v13 }
  0x7f   :  { %v46_v15 = vsel %vm44_vm1, %v12_v3, 0.0 }
  0x80   :  { %49 = vadd.xlane.f32.xlu1 %v46_v15  ;;  %v68_v16 = vpop.eup %67  ;;  %v25_v17 = vmul.f32 1.442695, %v22_v14 }
  0x81   :  { %27 = vadd.xlane.f32.xlu2 %v68_v16 }
  0x82   :  { %69 = vpow2.f32 %v25_v17 }
  0x88   :  { %v70_v18 = vpop.eup %69 }
  0x89   :  { %29 = vadd.xlane.f32.xlu2 %v70_v18 }
  0xeb   :  { %v48_v23 = vpop.xlane.xlu0 %47 }
  0xf3   :  { %v50_v30 = vpop.xlane.xlu1 %49 }
  0xf4   :  { %v28_v19 = vpop.xlane.xlu2 %27 }
  0xf5   :  { %71 = vlog2.f32 %v28_v19 }
  0xfb   :  { %v72_v20 = vpop.eup %71 }
  0xfc   :  { %v32_v21 = vmul.f32 0.6931472, %v72_v20  ;;  %v30_v22 = vpop.xlane.xlu2 %29 }
  0xfd   :  { %73 = vlog2.f32 %v30_v22 }
  0xfe   :  { %v35_v24 = vadd.f32 %v32_v21, %v18_v8 }
 0x100   :  { %v53_v25 = vsub.f32 %v35_v24, %v48_v23 }
 0x102   :  { %v55_v26 = vsel %vm51_vm2, %v53_v25, 0.0 }
 0x103   :  { %v74_v27 = vpop.eup %73  ;;  %58 = vst.msk [vmem:[%s111_s2] sm:$0xff] %vm57_vm3, %v55_v26 }
 0x104   :  { %v34_v28 = vmul.f32 0.6931472, %v74_v27 }
 0x106   :  { %v36_v29 = vadd.f32 %v34_v28, %v20_v13 }
 0x108   :  { %v54_v31 = vsub.f32 %v36_v29, %v50_v30 }
 0x10a   :  { %v56_v32 = vsel %vm52_vm4, %v54_v31, 0.0 }
 0x10b   :  { %59 = vst.msk [vmem:[%s111_s2 + $0x8] sm:$0xff] %vm57_vm3, %v56_v32 }

</bundles_post_ra>
